<compile_context>
chip_gen: v7x
topology: tpu7x:2x2x1
jax: 0.10.0
libtpu: 0.0.40
codegen_flags: <defaults>
</compile_context>

<pallas_src>
import functools

import jax
import jax.numpy as jnp
from jax.experimental import pallas as pl
from jax.experimental.pallas import tpu as pltpu


# -----------------------------------------------------------------------------
# Small helpers
# -----------------------------------------------------------------------------
def _round_up(n, m):
    return ((n + m - 1) // m) * m


def _sublane(dtype):
    # Sublane granularity of the second-to-last block dim for this dtype
    # (f32 -> 8, bf16 -> 16, int8/fp8 -> 32).
    return 8 * max(1, 4 // jnp.dtype(dtype).itemsize)


def _pick_row_tile(m_rows, requested, sublane):
    """Row tile: large enough to amortize the ~0.35us/grid-step overhead and fill
    the MXU M dim, dtype-sublane aligned, clamped to the data, and leaving >= 2
    grid steps when the data allows (so the "parallel" row axis can shard across
    v7x's two TensorCores)."""
    m_al = _round_up(m_rows, sublane)
    tile = min(_round_up(requested, sublane), m_al)
    half = _round_up(pl.cdiv(m_al, 2), sublane)
    if tile > half:
        tile = half
    return max(tile, sublane)


def _vmem_limit_bytes(working_set_bytes):
    """Explicit scoped-VMEM budget: 2x the estimated working set + slack, clamped
    to the device's VMEM capacity (64 MiB on v7x, 128 MiB on v5e/v6e)."""
    try:
        cap = int(pltpu.get_tpu_info().vmem_capacity_bytes)
    except Exception:
        cap = 64 << 20  # conservative (v7x per-TC VMEM)
    want = 2 * int(working_set_bytes) + (4 << 20)
    return int(min(max(want, 16 << 20), cap - (4 << 20)))


# -----------------------------------------------------------------------------
# Single-buffering of constant-index (resident) operands, feature-probed.
# -----------------------------------------------------------------------------
_SINGLE_BUFFER_OK = None


def _probe_single_buffer():
    """Does this JAX/Mosaic support pl.Buffered(1) on a constant-index BlockSpec?
    (Single-buffer resident weights instead of the default double buffer: at real
    shapes this halves the weight VMEM footprint.)"""
    def probe_kernel(x_ref, w_ref, o_ref):
        o_ref[...] = x_ref[...] + w_ref[...]

    try:
        w_spec = pl.BlockSpec((8, 128), lambda i: (0, 0),
                              pipeline_mode=pl.Buffered(1))
        fn = pl.pallas_call(
            probe_kernel,
            out_shape=jax.ShapeDtypeStruct((16, 128), jnp.float32),
            grid=(2,),
            in_specs=[pl.BlockSpec((8, 128), lambda i: (i, 0)), w_spec],
            out_specs=pl.BlockSpec((8, 128), lambda i: (i, 0)),
        )
        res = jax.block_until_ready(
            fn(jnp.zeros((16, 128), jnp.float32), jnp.ones((8, 128), jnp.float32)))
        return bool(jnp.all(res == 1.0))
    except Exception:
        return False


def _single_buffer_ok():
    global _SINGLE_BUFFER_OK
    if _SINGLE_BUFFER_OK is None:
        _SINGLE_BUFFER_OK = _probe_single_buffer()
    return _SINGLE_BUFFER_OK


def _resident_spec(block_shape):
    """BlockSpec for an operand whose block index never changes across the grid."""
    ndim = len(block_shape)
    index_map = lambda i: (0,) * ndim
    if _single_buffer_ok():
        return pl.BlockSpec(block_shape, index_map, pipeline_mode=pl.Buffered(1))
    return pl.BlockSpec(block_shape, index_map)


def _resident_buffers():
    return 1 if _single_buffer_ok() else 2


# -----------------------------------------------------------------------------
# Final LayerNorm of the Decoder:  alpha * (x - mean) / (std + eps) + beta
# torch.std semantics: unbiased (ddof=1); eps is added to std (not variance).
# -----------------------------------------------------------------------------
def _layernorm_kernel(x_ref, alpha_ref, beta_ref, o_ref, *, eps):
    x = x_ref[...].astype(jnp.float32)                         # (tm, D)
    d = x.shape[-1]
    mean = jnp.mean(x, axis=-1, keepdims=True)
    xc = x - mean
    var = jnp.sum(xc * xc, axis=-1, keepdims=True) / (d - 1)   # unbiased std
    inv = pl.reciprocal(jnp.sqrt(var) + eps, approx=True)      # EUP, off the VALU
    y = (alpha_ref[...].astype(jnp.float32) * (xc * inv)
         + beta_ref[...].astype(jnp.float32))
    o_ref[...] = y.astype(o_ref.dtype)


def layer_norm(x, alpha, beta, *, eps=1e-6, row_tile=512):
    """x: (batch, seq, d_model); alpha/beta: (d_model,)."""
    b, s, d = x.shape
    m = b * s
    tm = _pick_row_tile(m, row_tile, _sublane(x.dtype))

    x2d = x.reshape(m, d)                  # no pad: ragged last block is masked
    alpha2d = alpha.reshape(1, d).astype(jnp.float32)
    beta2d = beta.reshape(1, d).astype(jnp.float32)

    itemsize = jnp.dtype(x.dtype).itemsize
    cost = pl.CostEstimate(flops=8 * m * d, transcendentals=2 * m,
                           bytes_accessed=2 * m * d * itemsize + 8 * d)
    working = 4 * tm * d * itemsize + _resident_buffers() * 2 * d * 4 + tm * d * 4

    out = pl.pallas_call(
        functools.partial(_layernorm_kernel, eps=eps),
        out_shape=jax.ShapeDtypeStruct((m, d), x.dtype),
        grid_spec=pltpu.PrefetchScalarGridSpec(
            num_scalar_prefetch=0,
            grid=(pl.cdiv(m, tm),),
            in_specs=[
                pl.BlockSpec((tm, d), lambda i: (i, 0)),   # x rows (streamed)
                _resident_spec((1, d)),                    # alpha (resident)
                _resident_spec((1, d)),                    # beta  (resident)
            ],
            out_specs=pl.BlockSpec((tm, d), lambda i: (i, 0)),
        ),
        compiler_params=pltpu.CompilerParams(
            dimension_semantics=("parallel",),
            vmem_limit_bytes=_vmem_limit_bytes(working)),
        cost_estimate=cost,
    )(x2d, alpha2d, beta2d)

    return out.reshape(b, s, d)


# -----------------------------------------------------------------------------
# Stand-in decoder layer: fused position-wise FFN  relu(x @ W1 + b1) @ W2 + b2
# (eval-mode dropout == identity), optionally fusing the Decoder's final
# LayerNorm into the epilogue.
# -----------------------------------------------------------------------------
def _ffn_body(x_ref, w1_ref, b1_ref, w2_ref, b2_ref):
    cdt = w1_ref.dtype                                  # MXU compute dtype (bf16)
    x = x_ref[...].astype(cdt)                          # cast in-kernel, not in XLA
    h = jnp.dot(x, w1_ref[...], preferred_element_type=jnp.float32)
    h = jnp.maximum(h + b1_ref[...].astype(jnp.float32), 0.0)   # ReLU
    # TODO(synk): training-mode stochastic dropout (pltpu.prng_*) not implemented.
    y = jnp.dot(h.astype(cdt), w2_ref[...], preferred_element_type=jnp.float32)
    return y + b2_ref[...].astype(jnp.float32)


def _ffn_kernel(x_ref, w1_ref, b1_ref, w2_ref, b2_ref, o_ref):
    o_ref[...] = _ffn_body(x_ref, w1_ref, b1_ref, w2_ref, b2_ref).astype(o_ref.dtype)


def _ffn_ln_kernel(x_ref, w1_ref, b1_ref, w2_ref, b2_ref, alpha_ref, beta_ref,
                   o_ref, *, eps):
    # FFN + the Decoder's final LayerNorm fused in the epilogue: saves one full
    # HBM read+write of the (B*S, d_model) activation (the whole LN kernel cost).
    y = _ffn_body(x_ref, w1_ref, b1_ref, w2_ref, b2_ref)        # (tm, D) f32
    d = y.shape[-1]
    mean = jnp.mean(y, axis=-1, keepdims=True)
    yc = y - mean
    var = jnp.sum(yc * yc, axis=-1, keepdims=True) / (d - 1)
    inv = pl.reciprocal(jnp.sqrt(var) + eps, approx=True)
    out = (alpha_ref[...].astype(jnp.float32) * (yc * inv)
           + beta_ref[...].astype(jnp.float32))
    o_ref[...] = out.astype(o_ref.dtype)


def position_wise_ffn(x, w1, b1, w2, b2, *, row_tile=256,
                      compute_dtype=jnp.bfloat16, out_dtype=None, ln=None):
    """x: (batch, seq, d_model); w1: (d_model, d_ff); w2: (d_ff, d_model).

    compute_dtype: MXU input dtype for both matmuls (f32 accumulation kept).
    out_dtype: defaults to compute_dtype so the layer stack stays bf16 end-to-end.
    ln=(alpha, beta, eps): fuse the Decoder's final LayerNorm into the epilogue.
    """
    b, s, d_model = x.shape
    d_ff = w1.shape[1]
    m = b * s
    if out_dtype is None:
        out_dtype = compute_dtype
    sub = max(_sublane(x.dtype), _sublane(out_dtype))
    tm = _pick_row_tile(m, row_tile, sub)

    x2d = x.reshape(m, d_model)            # no pad, no wrapper-side activation cast
    w1 = w1.astype(compute_dtype)          # weights resident in VMEM (bf16)
    w2 = w2.astype(compute_dtype)
    b1_2d = b1.reshape(1, d_ff).astype(jnp.float32)
    b2_2d = b2.reshape(1, d_model).astype(jnp.float32)

    x_item = jnp.dtype(x.dtype).itemsize
    o_item = jnp.dtype(out_dtype).itemsize
    w_item = jnp.dtype(compute_dtype).itemsize
    # Working set: double-buffered x/out tiles + resident weights/biases (+LN
    # params) + the (tm, d_ff) f32 intermediate.
    working = (2 * tm * d_model * (x_item + o_item)
               + _resident_buffers() * (2 * d_model * d_ff * w_item
                                        + 4 * (d_ff + 3 * d_model))
               + tm * (d_ff + d_model) * 4)
    # TODO(synk): for very large d_ff on v5e, stream W1/W2 panels over a d_ff grid
    # axis with a VMEM accumulator instead of full residency.
    cost = pl.CostEstimate(
        flops=4 * m * d_model * d_ff + (8 * m * d_model if ln is not None else 0),
        transcendentals=(2 * m if ln is not None else 0),
        bytes_accessed=(m * d_model * (x_item + o_item)
                        + 2 * d_model * d_ff * w_item + 4 * (d_ff + d_model)))

    in_specs = [
        pl.BlockSpec((tm, d_model), lambda i: (i, 0)),   # x rows (streamed)
        _resident_spec((d_model, d_ff)),                 # W1 (resident)
        _resident_spec((1, d_ff)),                       # b1
        _resident_spec((d_ff, d_model)),                 # W2 (resident)
        _resident_spec((1, d_model)),                    # b2
    ]
    args = [x2d, w1, b1_2d, w2, b2_2d]

    if ln is None:
        kernel = _ffn_kernel
    else:
        alpha, beta, eps = ln
        kernel = functools.partial(_ffn_ln_kernel, eps=eps)
        in_specs += [_resident_spec((1, d_model)), _resident_spec((1, d_model))]
        args += [alpha.reshape(1, d_model).astype(jnp.float32),
                 beta.reshape(1, d_model).astype(jnp.float32)]

    out2d = pl.pallas_call(
        kernel,
        out_shape=jax.ShapeDtypeStruct((m, d_model), out_dtype),
        grid_spec=pltpu.PrefetchScalarGridSpec(
            num_scalar_prefetch=0,
            grid=(pl.cdiv(m, tm),),
            in_specs=in_specs,
            out_specs=pl.BlockSpec((tm, d_model), lambda i: (i, 0)),
        ),
        compiler_params=pltpu.CompilerParams(
            dimension_semantics=("parallel",),
            vmem_limit_bytes=_vmem_limit_bytes(working)),
        cost_estimate=cost,
    )(*args)

    return out2d.reshape(b, s, d_model)


# -----------------------------------------------------------------------------
# Decoder.forward: apply each provided layer, then the final LayerNorm (fused
# into the last layer's epilogue when the layer supports it).
# -----------------------------------------------------------------------------
def decoder_forward(x, memory, src_mask, tgt_mask, layer_fns, alpha, beta,
                    *, eps=1e-6):
    if not layer_fns:
        return layer_norm(x, alpha, beta, eps=eps)
    *body, last = layer_fns
    for layer_fn in body:
        x = layer_fn(x, memory, src_mask, tgt_mask)
    if getattr(last, "supports_fused_norm", False):
        return last(x, memory, src_mask, tgt_mask, ln=(alpha, beta, eps))
    x = last(x, memory, src_mask, tgt_mask)
    return layer_norm(x, alpha, beta, eps=eps)


if __name__ == "__main__":
    batch, seq, d_model, d_ff, n_layers = 2, 16, 32, 64, 2
    eps = 1e-6

    key = jax.random.PRNGKey(0)
    keys = jax.random.split(key, 4 + 4 * n_layers)

    x = jax.random.normal(keys[0], (batch, seq, d_model), dtype=jnp.float32)
    memory = jax.random.normal(keys[1], (batch, seq, d_model), dtype=jnp.float32)
    src_mask = jnp.ones((batch, 1, seq), dtype=jnp.float32)
    tgt_mask = jnp.tril(jnp.ones((seq, seq), dtype=jnp.float32))[None]

    layer_params = []
    for li in range(n_layers):
        kw1, kb1, kw2, kb2 = keys[2 + 4 * li: 6 + 4 * li]
        w1 = jax.random.normal(kw1, (d_model, d_ff), dtype=jnp.float32) * 0.1
        b1 = jax.random.normal(kb1, (d_ff,), dtype=jnp.float32) * 0.1
        w2 = jax.random.normal(kw2, (d_ff, d_model), dtype=jnp.float32) * 0.1
        b2 = jax.random.normal(kb2, (d_model,), dtype=jnp.float32) * 0.1
        layer_params.append((w1, b1, w2, b2))

    alpha = 1.0 + 0.1 * jax.random.normal(keys[2 + 4 * n_layers],
                                          (d_model,), dtype=jnp.float32)
    beta = 0.1 * jax.random.normal(keys[3 + 4 * n_layers],
                                   (d_model,), dtype=jnp.float32)

    # Stand-in decoder layers = Pallas FFN kernels (they ignore memory/masks);
    # intermediate layers keep activations bf16, the last layer can fuse the
    # Decoder's final LayerNorm and emit f32.
    def make_layer(params):
        w1, b1, w2, b2 = params
        def layer_fn(h, mem, s_mask, t_mask, ln=None):
            out_dt = jnp.float32 if ln is not None else None
            return position_wise_ffn(h, w1, b1, w2, b2, ln=ln, out_dtype=out_dt)
        layer_fn.supports_fused_norm = True
        return layer_fn

    def make_plain_layer(params):   # no-fusion variant (exercises standalone LN)
        w1, b1, w2, b2 = params
        def layer_fn(h, mem, s_mask, t_mask):
            return position_wise_ffn(h, w1, b1, w2, b2)
        return layer_fn

    layer_fns = [make_layer(p) for p in layer_params]
    out = decoder_forward(x, memory, src_mask, tgt_mask, layer_fns,
                          alpha, beta, eps=eps)
    out = jax.block_until_ready(out)

    # Pure-JAX reference mimicking the kernel's numerics policy: bf16 MXU inputs,
    # f32 accumulation, bf16 activations between layers, f32 final LayerNorm.
    h = x
    for idx, (w1, b1, w2, b2) in enumerate(layer_params):
        a = jnp.dot(h.astype(jnp.bfloat16), w1.astype(jnp.bfloat16),
                    preferred_element_type=jnp.float32) + b1
        a = jnp.maximum(a, 0.0)
        y = jnp.dot(a.astype(jnp.bfloat16), w2.astype(jnp.bfloat16),
                    preferred_element_type=jnp.float32) + b2
        h = y if idx == n_layers - 1 else y.astype(jnp.bfloat16)
    h = h.astype(jnp.float32)
    mean = jnp.mean(h, axis=-1, keepdims=True)
    hc = h - mean
    std = jnp.sqrt(jnp.sum(hc * hc, axis=-1, keepdims=True) / (d_model - 1))
    ref = alpha * hc / (std + eps) + beta

    assert out.shape == (batch, seq, d_model)
    assert out.dtype == jnp.float32
    err = float(jnp.max(jnp.abs(out - ref)))
    assert jnp.allclose(out, ref, atol=1e-2, rtol=1e-2), err

    # Sanity: non-fused path (opaque last layer -> standalone Pallas LayerNorm)
    # agrees with the fused path (up to the extra bf16 round trip it performs).
    out_unfused = decoder_forward(x, memory, src_mask, tgt_mask,
                                  [make_plain_layer(p) for p in layer_params],
                                  alpha, beta, eps=eps)
    out_unfused = jax.block_until_ready(out_unfused).astype(jnp.float32)
    err2 = float(jnp.max(jnp.abs(out_unfused - out)))
    assert jnp.allclose(out_unfused, out, atol=3e-2, rtol=3e-2), err2

    print("KERNEL_OK")
</pallas_src>

<mosaic_0001>
module attributes {stable_mosaic.version = 11 : i64} {
  func.func @probe_kernel(%arg0: i32, %arg1: memref<8x128xf32, #tpu.memory_space<vmem>>, %arg2: memref<8x128xf32, #tpu.memory_space<vmem>>, %arg3: memref<8x128xf32, #tpu.memory_space<vmem>>) attributes {dimension_semantics = [#tpu.dimension_semantics<arbitrary>], iteration_bounds = array<i64: 2>, scalar_prefetch = 0 : i64, scratch_operands = 0 : i64, tpu.core_type = #tpu.core_type<tc>, window_params = [{transform_indices = @transform_0, window_bounds = array<i64: 8, 128>}, {pipeline_mode = #tpu.pipeline_mode<synchronous>, transform_indices = @transform_1, window_bounds = array<i64: 8, 128>}, {transform_indices = @transform_2, window_bounds = array<i64: 8, 128>}]} {
    %c0 = arith.constant 0 : index
    %c0_0 = arith.constant 0 : index
    %0 = vector.load %arg1[%c0, %c0_0] : memref<8x128xf32, #tpu.memory_space<vmem>>, vector<8x128xf32>
    %c0_1 = arith.constant 0 : index
    %c0_2 = arith.constant 0 : index
    %1 = vector.load %arg2[%c0_1, %c0_2] : memref<8x128xf32, #tpu.memory_space<vmem>>, vector<8x128xf32>
    %2 = arith.addf %0, %1 : vector<8x128xf32>
    %c0_3 = arith.constant 0 : index
    %c0_4 = arith.constant 0 : index
    %3 = vector.load %arg3[%c0_3, %c0_4] : memref<8x128xf32, #tpu.memory_space<vmem>>, vector<8x128xf32>
    tpu.vector_store %arg3[%c0_3, %c0_4], %2 {strides = array<i32>} : memref<8x128xf32, #tpu.memory_space<vmem>>, vector<8x128xf32>,
    return
  }
  func.func @transform_0(%arg0: i32) -> (i32, i32) {
    %c0_i32 = arith.constant 0 : i32
    %c0_i32_0 = arith.constant 0 : i32
    return %arg0, %c0_i32 : i32, i32
  }
  func.func @transform_1(%arg0: i32) -> (i32, i32) {
    %c0_i32 = arith.constant 0 : i32
    %c0_i32_0 = arith.constant 0 : i32
    %c0_i32_1 = arith.constant 0 : i32
    return %c0_i32, %c0_i32_0 : i32, i32
  }
  func.func @transform_2(%arg0: i32) -> (i32, i32) {
    %c0_i32 = arith.constant 0 : i32
    %c0_i32_0 = arith.constant 0 : i32
    return %arg0, %c0_i32 : i32, i32
  }
}

module attributes {stable_mosaic.version = 11 : i64} {
  func.func @_ffn_kernel(%arg0: i32, %arg1: memref<16x32xf32, #tpu.memory_space<vmem>>, %arg2: memref<32x64xbf16, #tpu.memory_space<vmem>>, %arg3: memref<1x64xf32, #tpu.memory_space<vmem>>, %arg4: memref<64x32xbf16, #tpu.memory_space<vmem>>, %arg5: memref<1x32xf32, #tpu.memory_space<vmem>>, %arg6: memref<16x32xbf16, #tpu.memory_space<vmem>>) attributes {dimension_semantics = [#tpu.dimension_semantics<parallel>], iteration_bounds = array<i64: 2>, scalar_prefetch = 0 : i64, scratch_operands = 0 : i64, tpu.core_type = #tpu.core_type<tc>, window_params = [{transform_indices = @transform_0, window_bounds = array<i64: 16, 32>}, {pipeline_mode = #tpu.pipeline_mode<synchronous>, transform_indices = @transform_1, window_bounds = array<i64: 32, 64>}, {pipeline_mode = #tpu.pipeline_mode<synchronous>, transform_indices = @transform_2, window_bounds = array<i64: 1, 64>}, {pipeline_mode = #tpu.pipeline_mode<synchronous>, transform_indices = @transform_3, window_bounds = array<i64: 64, 32>}, {pipeline_mode = #tpu.pipeline_mode<synchronous>, transform_indices = @transform_4, window_bounds = array<i64: 1, 32>}, {transform_indices = @transform_5, window_bounds = array<i64: 16, 32>}]} {
    %c0 = arith.constant 0 : index
    %c0_0 = arith.constant 0 : index
    %0 = vector.load %arg1[%c0, %c0_0] : memref<16x32xf32, #tpu.memory_space<vmem>>, vector<16x32xf32>
    %1 = arith.truncf %0 : vector<16x32xf32> to vector<16x32xbf16>
    %c0_1 = arith.constant 0 : index
    %c0_2 = arith.constant 0 : index
    %2 = vector.load %arg2[%c0_1, %c0_2] : memref<32x64xbf16, #tpu.memory_space<vmem>>, vector<32x64xbf16>
    %cst = arith.constant dense<0.000000e+00> : vector<16x64xf32>
    %3 = tpu.matmul %1, %2, %cst {dimension_numbers = #tpu.dot_dimension_numbers<[1], [0], [0], [1], [0, 0, 1, 1], [], []>} : vector<16x32xbf16>, vector<32x64xbf16>, vector<16x64xf32> -> vector<16x64xf32>
    %c0_3 = arith.constant 0 : index
    %c0_4 = arith.constant 0 : index
    %4 = vector.load %arg3[%c0_3, %c0_4] : memref<1x64xf32, #tpu.memory_space<vmem>>, vector<1x64xf32>
    %5 = vector.broadcast %4 : vector<1x64xf32> to vector<16x64xf32>
    %6 = arith.addf %3, %5 : vector<16x64xf32>
    %cst_5 = arith.constant 0.000000e+00 : f32
    %7 = vector.broadcast %cst_5 : f32 to vector<16x64xf32>
    %8 = arith.maximumf %6, %7 : vector<16x64xf32>
    %9 = arith.truncf %8 : vector<16x64xf32> to vector<16x64xbf16>
    %c0_6 = arith.constant 0 : index
    %c0_7 = arith.constant 0 : index
    %10 = vector.load %arg4[%c0_6, %c0_7] : memref<64x32xbf16, #tpu.memory_space<vmem>>, vector<64x32xbf16>
    %cst_8 = arith.constant dense<0.000000e+00> : vector<16x32xf32>
    %11 = tpu.matmul %9, %10, %cst_8 {dimension_numbers = #tpu.dot_dimension_numbers<[1], [0], [0], [1], [0, 0, 1, 1], [], []>} : vector<16x64xbf16>, vector<64x32xbf16>, vector<16x32xf32> -> vector<16x32xf32>
    %c0_9 = arith.constant 0 : index
    %c0_10 = arith.constant 0 : index
    %12 = vector.load %arg5[%c0_9, %c0_10] : memref<1x32xf32, #tpu.memory_space<vmem>>, vector<1x32xf32>
    %13 = vector.broadcast %12 : vector<1x32xf32> to vector<16x32xf32>
    %14 = arith.addf %11, %13 : vector<16x32xf32>
    %15 = arith.truncf %14 : vector<16x32xf32> to vector<16x32xbf16>
    %c0_11 = arith.constant 0 : index
    %c0_12 = arith.constant 0 : index
    %16 = vector.load %arg6[%c0_11, %c0_12] : memref<16x32xbf16, #tpu.memory_space<vmem>>, vector<16x32xbf16>
    tpu.vector_store %arg6[%c0_11, %c0_12], %15 {strides = array<i32>} : memref<16x32xbf16, #tpu.memory_space<vmem>>, vector<16x32xbf16>,
    return
  }
  func.func @transform_0(%arg0: i32) -> (i32, i32) {
    %c0_i32 = arith.constant 0 : i32
    %c0_i32_0 = arith.constant 0 : i32
    return %arg0, %c0_i32 : i32, i32
  }
  func.func @transform_1(%arg0: i32) -> (i32, i32) {
    %c0_i32 = arith.constant 0 : i32
    %c0_i32_0 = arith.constant 0 : i32
    %c0_i32_1 = arith.constant 0 : i32
    return %c0_i32, %c0_i32_0 : i32, i32
  }
  func.func @transform_2(%arg0: i32) -> (i32, i32) {
    %c0_i32 = arith.constant 0 : i32
    %c0_i32_0 = arith.constant 0 : i32
    %c0_i32_1 = arith.constant 0 : i32
    return %c0_i32, %c0_i32_0 : i32, i32
  }
  func.func @transform_3(%arg0: i32) -> (i32, i32) {
    %c0_i32 = arith.constant 0 : i32
    %c0_i32_0 = arith.constant 0 : i32
    %c0_i32_1 = arith.constant 0 : i32
    return %c0_i32, %c0_i32_0 : i32, i32
  }
  func.func @transform_4(%arg0: i32) -> (i32, i32) {
    %c0_i32 = arith.constant 0 : i32
    %c0_i32_0 = arith.constant 0 : i32
    %c0_i32_1 = arith.constant 0 : i32
    return %c0_i32, %c0_i32_0 : i32, i32
  }
  func.func @transform_5(%arg0: i32) -> (i32, i32) {
    %c0_i32 = arith.constant 0 : i32
    %c0_i32_0 = arith.constant 0 : i32
    return %arg0, %c0_i32 : i32, i32
  }
}

</mosaic_0001>

<bundles_post_ra>
// kernel: tpu_custom_call.1
= control target key start
LH: loop header
LB: loop body
LE: loop exit
PB: predicated region body
PF: predicated region fallthrough
CT: control target
= control target key end

     0   :  { %7 = vsyncpa [#allocation3], 0  ;;  %s690_s0 = inlined_call_operand.hbm [shape: f32[16,128], index: 0, kind: input, shape index: {}]   ;;  %s691_s1 = inlined_call_operand.hbm [shape: f32[8,128], index: 1, kind: input, shape index: {}]   ;;  %s692_s2 = inlined_call_operand.hbm [shape: f32[16,128], index: 2, kind: output, shape index: {}]  }
   0x1   :  { %9 = vsyncpa [#allocation3 + $0x1], 0 }
   0x2   :  { %10 = vsyncpa [#allocation6], 0 }
   0x3   :  { %11 = vsyncpa [#allocation4], 0 }
   0x4   :  { %13 = vsyncpa [#allocation4 + $0x1], 0  ;;  %s489_s9 = smov 0   ;;  %s491_s10 = smov 0  }
   0x5   :  { %s493_s11 = smov 0   ;;  %s495_s12 = smov 0  }
   0x6 LB: > { %s510_s13 = sadd.s32 4294967295, %s469_s12   ;;  %s270_s14 = sadd.s32 4294967294, %s469_s12   ;;  %s469_s12 = sphi %s495_s12, %s716_s12   ;;  %s465_s11 = sphi %s493_s11, %s715_s11   ;;  %s461_s10 = sphi %s491_s10, %s714_s10   ;;  %s457_s9 = sphi %s489_s9, %s713_s9  }
   0x7   : > { %p39_p0 = scmp.ne.s32.totalorder %s461_s10, %s457_s9  ;;  %p693_p1 = scmp.eq.s32.totalorder %s510_s13, 0 }
   0x8   : > { %p90_p3 = scmp.eq.s32.totalorder %s270_s14, 1  ;;  %p271_p5 = scmp.ge.s32.totalorder %s469_s12, 1 }
   0x9   : > { %p519_p4 = por %p693_p1, %p39_p0  ;;  %p97_p7 = scmp.lt.s32.totalorder %s469_s12, 3 }
   0xa   : > { %p524_p6 = por %p90_p3, %p39_p0  ;;  %s471_s18 = smov [#allocation5]  }
   0xb   : > { %s696_s15 = scalar_select %p519_p4, 1, 0 }
   0xc   : > { %s697_s16 = scalar_select %p524_p6, 1, 0 }
   0xd   : > { %p529_p8 = pnand %p271_p5, %p97_p7  ;;  %s110_s19 = sshll.u32 %s471_s18, 4  ;;  %s111_s19 = int_to_ptr.vmem [resolvable:$true] %s110_s19 }
   0xe   : > { %s537_s20 = sadd.s32 1, %s469_s12   ;;  %s26_s24 = sadd.s32 1, %s465_s11 }
   0xf   : > { %s698_s17 = scalar_select %p529_p8, 1, 0 }
  0x10   : > { %p292_p10 = pneg %p529_p8  ;;  %s23_s22 = ssub.s32 %s469_s12, %s537_s20 }
  0x11   : > { %p547_p12 = scmp.eq.s32.totalorder %s23_s22, 0  ;;  %s341_s27 = scalar_lea.hbm %s691_s1, 128 }
  0x12   : > { %p541_p11 = pnand %p292_p10, %p693_p1  ;;  %p342_p0 = scmp.ne.s32.totalorder %s691_s1, %s341_s27 }
  0x13   : > { %s700_s23 = scalar_select %p547_p12, 1, 0 }
  0x14   : > { %p343_p3 = pneg %p541_p11  ;;  %p348_p10 = scmp.lt.u32.totalorder %s341_s27, %s691_s1 }
  0x16   : > { %p344_p5 = pnand %p343_p3, %p342_p0 }
  0x18   : > { %p345_p7 = pneg %p344_p5 }
  0x1a   : > { %p350_p9 = pnand %p348_p10, %p345_p7 }
  0x1c   : > { %353 = shalt.err (!%p350_p9)
}
  0x1d   : > { %s354_s4 = scalar_lea.vmem %s111_s19, 128  ;;  %p362_p6 = scmp.lt.s32.totalorder %s111_s19, %s111_s19 }
  0x1e   : > { %p355_p1 = scmp.ne.s32.totalorder %s111_s19, %s354_s4  ;;  %p363_p4 = scmp.lt.s32.totalorder %s354_s4, %s354_s4 }
  0x20   : > { %p357_p2 = pnand %p355_p1, %p343_p3  ;;  %p364_p8 = por %p363_p4, %p362_p6 }
  0x22   : > { %p358_p13 = pneg %p357_p2 }
  0x24   : > { %p365_p12 = pnand %p364_p8, %p358_p13 }
  0x26   : > { %368 = shalt.err (!%p365_p12)
}
  0x27   : > { %295 = dma.hbm_to_vmem [thread:$0]  (!%p541_p11), %s691_s1, 128, %s111_s19, [#allocation6]  }
  0x28   : > { %p701_p1 = scmp.ne.s32.totalorder %s700_s23, 0  ;;  %p34_p2 = scmp.eq.s32.totalorder %s469_s12, 0 }
  0x29   : > { %p702_p4 = scmp.ne.s32.totalorder %s465_s11, %s461_s10  ;;  %p703_p6 = scmp.eq.s32.totalorder %s510_s13, 1 }
  0x2a   : > { %s573_s7 = scalar_select %p701_p1, %s465_s11, %s26_s24  }
  0x2b   : > { %p581_p8 = por %p703_p6, %p702_p4  ;;  %p305_p9 = scmp.lt.s32.totalorder %s469_s12, 2 }
  0x2c   : > { %s121_s14 = sand.u32 1, %s465_s11   ;;  %p705_p12 = pmov %p702_p4 }
  0x2d   : > { %s274_s18 = sshll.u32 %s121_s14, 3  ;;  %s275_s21 = sshll.u32 %s469_s12, 7 }
  0x2e   : > { %p35_p13 = por %p34_p2, %p705_p12  ;;  %s594_s19 = scalar_lea.hbm %s690_s0, %s275_s21 }
  0x2f   : > { %s125_s23 = scalar_lea.vmem [#allocation2], %s274_s18  ;;  %s122_s27 = scalar_lea.sflag [#allocation3], %s121_s14 }
  0x30   : > { %s132_s24 = sshll.u32 %s125_s23, 4  ;;  %p596_p11 = pnand %p305_p9, %p35_p13  ;;  %s600_s24 = int_to_ptr.vmem [resolvable:$true] %s132_s24 }
  0x31   : > { %s369_s28 = scalar_lea.hbm %s594_s19, 128  ;;  %s374_s3 = scalar_lea.hbm %s690_s0, 256 }
  0x32   : > { %p370_p0 = scmp.ne.s32.totalorder %s594_s19, %s369_s28  ;;  %p371_p3 = pneg %p596_p11 }
  0x33   : > { %p375_p10 = scmp.lt.u32.totalorder %s594_s19, %s690_s0  ;;  %p376_p1 = scmp.lt.u32.totalorder %s374_s3, %s369_s28 }
  0x34   : > { %p372_p5 = pnand %p371_p3, %p370_p0  ;;  %p378_p4 = scmp.lt.u32.totalorder %s369_s28, %s594_s19 }
  0x35   : > { %p377_p2 = por %p376_p1, %p375_p10 }
  0x36   : > { %p373_p7 = pneg %p372_p5 }
  0x37   : > { %p379_p6 = por %p378_p4, %p377_p2 }
  0x39   : > { %p380_p9 = pnand %p379_p6, %p373_p7 }
  0x3b   : > { %383 = shalt.err (!%p380_p9)
}
  0x3c   : > { %s384_s6 = scalar_lea.vmem %s600_s24, 128  ;;  %s472_s14 = smov [#allocation2]  }
  0x3d   : > { %p385_p12 = scmp.ne.s32.totalorder %s600_s24, %s384_s6  ;;  %s389_s18 = sshll.u32 %s472_s14, 4  ;;  %s390_s18 = int_to_ptr.vmem [resolvable:$false] %s389_s18 }
  0x3e   : > { %s391_s21 = scalar_lea.vmem %s390_s18, 256  ;;  %p392_p5 = scmp.lt.s32.totalorder %s600_s24, %s390_s18 }
  0x3f   : > { %p387_p13 = pnand %p385_p12, %p371_p3  ;;  %p393_p10 = scmp.lt.s32.totalorder %s391_s21, %s384_s6 }
  0x41   : > { %p388_p0 = pneg %p387_p13  ;;  %p394_p1 = por %p393_p10, %p392_p5 }
  0x43   : > { %p395_p2 = pnand %p394_p1, %p388_p0 }
  0x45   : > { %398 = shalt.err (!%p395_p2)
}
  0x46   : > { %299 = dma.hbm_to_vmem [thread:$0]  (!%p596_p11), %s594_s19, 128, %s600_s24, %s122_s27  }
  0x47   : > { %p707_p7 = scmp.ne.s32.totalorder %s698_s17, 0 }
  0x48   : > { %s630_s22 = sand.u32 (!%p707_p7), 1, %s461_s10   ;;  %p708_p3 = scmp.ne.s32.totalorder (!%p707_p7), %s696_s15, 0 }
  0x49   : > { %141 = sbr.rel (%p707_p7) target bundleno = 109 (0x6d), region = 28  ;;  %s277_s25 = sshll.u32 (!%p707_p7), %s630_s22, 3 }
  0x4a   : > { %s144_s23 = scalar_lea.sflag (!%p707_p7), [#allocation3], %s630_s22  ;;  %s147_s28 = scalar_lea.vmem (!%p707_p7), [#allocation2], %s277_s25 }
  0x50   : > { %444 = dma.done.wait (%p708_p3), %s144_s23, 128  }
  0x51   : > { %446 = vsyncadd (%p708_p3), %s144_s23, 4294967168  ;;  %p709_p4 = scmp.eq.s32.totalorder %s510_s13, 0 }
  0x53   : > { %448 = dma.done.wait (%p709_p4), [#allocation6], 128   ;;  %p710_p11 = pmov %p709_p4 }
  0x54   : > { %s171_s17 = scalar_lea.vmem [#allocation7], %s277_s25  ;;  %s281_s24 = sshll.u32 %s510_s13, 7  ;;  %v172_v0 = vld [vmem:[%s147_s28] sm:$0xff]  ;;  %v173_v1 = vld [vmem:[#allocation5] sm:$0xff] }
  0x55   : > { %450 = vsyncadd (%p710_p11), [#allocation6], 4294967168  ;;  %s190_s19 = sshll.u32 %s171_s17, 4  ;;  %v174_v2 = vadd.f32 %v173_v1, %v172_v0  ;;  %s648_s27 = scalar_lea.hbm %s692_s2, %s281_s24  ;;  %s643_s19 = int_to_ptr.vmem [resolvable:$true] %s190_s19 }
  0x56   : > { %s177_s29 = scalar_lea.sflag [#allocation4], %s630_s22  ;;  %s399_s30 = scalar_lea.vmem %s643_s19, 128 }
  0x57   : > { %175 = vst [vmem:[%s171_s17] sm:$0xff] %v174_v2  ;;  %p400_p6 = scmp.ne.s32.totalorder %s643_s19, %s399_s30  ;;  %s473_s13 = smov [#allocation7]  }
  0x58   : > { %s403_s3 = sshll.u32 %s473_s13, 4  ;;  %s404_s3 = int_to_ptr.vmem [resolvable:$false] %s403_s3 }
  0x59   : > { %p401_p9 = pnand %p400_p6, %p581_p8  ;;  %s405_s4 = scalar_lea.vmem %s404_s3, 256 }
  0x5a   : > { %p406_p13 = scmp.lt.s32.totalorder %s643_s19, %s404_s3  ;;  %p407_p0 = scmp.lt.s32.totalorder %s405_s4, %s399_s30 }
  0x5b   : > { %p402_p12 = pneg %p401_p9 }
  0x5c   : > { %p408_p5 = por %p407_p0, %p406_p13 }
  0x5e   : > { %p409_p10 = pnand %p408_p5, %p402_p12 }
  0x60   : > { %412 = shalt.err (!%p409_p10)
}
  0x61   : > { %s413_s5 = scalar_lea.hbm %s648_s27, 128  ;;  %s417_s18 = scalar_lea.hbm %s692_s2, 256 }
  0x62   : > { %p414_p1 = scmp.ne.s32.totalorder %s648_s27, %s413_s5  ;;  %p418_p3 = scmp.lt.u32.totalorder %s648_s27, %s692_s2 }
  0x63   : > { %p419_p4 = scmp.lt.u32.totalorder %s417_s18, %s413_s5  ;;  %p421_p6 = scmp.lt.u32.totalorder %s413_s5, %s648_s27 }
  0x64   : > { %p415_p2 = pnand %p414_p1, %p581_p8 }
  0x65   : > { %p420_p11 = por %p419_p4, %p418_p3 }
  0x66   : > { %p416_p7 = pneg %p415_p2 }
  0x67   : > { %p422_p9 = por %p421_p6, %p420_p11 }
  0x69   : > { %p423_p12 = pnand %p422_p9, %p416_p7 }
  0x6b   : > { %426 = shalt.err (!%p423_p12)
}
  0x6c   : > { %290 = dma.vmem_to_hbm [thread:$0]  (%p581_p8), %s643_s19, 128, %s648_s27, %s177_s29  }
  0x6d PF: > { %s202_s25 = sand.u32 1, %s457_s9   ;;  %p711_p13 = scmp.ne.s32.totalorder %s697_s16, 0 }
  0x6e   : > { %p712_p0 = scmp.ge.s32.totalorder %s469_s12, 2  ;;  %s203_s23 = scalar_lea.sflag [#allocation4], %s202_s25 }
  0x70   : > { %p301_p5 = pnand %p712_p0, %p711_p13 }
  0x72   : > { %452 = dma.done.wait (!%p301_p5), %s203_s23, 128  }
  0x73   : > { %454 = vsyncadd (!%p301_p5), %s203_s23, 4294967168  ;;  %p16_p10 = scmp.ge.s32.totalorder %s537_s20, 4   ;;  %s713_s9 = smov %s461_s10 }
  0x74   : > { %s714_s10 = smov %s465_s11  ;;  %s715_s11 = smov %s573_s7 }
  0x75   : > { %s716_s12 = smov %s537_s20  ;;  %18 = sbr.rel (!%p16_p10) target bundleno = 6 (0x6), region = 77 }
  0x7c   :  { %208 = vsyncpa [#allocation3], 1 }
  0x7d   :  { %210 = vsyncpa [#allocation3 + $0x1], 1 }
  0x7e   :  { %211 = vsyncpa [#allocation6], 1 }
  0x7f   :  { %212 = vsyncpa [#allocation4], 1 }
  0x80   :  { %214 = vsyncpa [#allocation4 + $0x1], 1 }

// kernel: tpu_custom_call.1
= control target key start
LH: loop header
LB: loop body
LE: loop exit
PB: predicated region body
PF: predicated region fallthrough
CT: control target
= control target key end

     0   :  { %10 = vsyncpa [#allocation3], 0  ;;  %s801_s0 = inlined_call_operand.vmem [shape: f32[32,32], index: 0, kind: input, shape index: {}]   ;;  %s802_s1 = inlined_call_operand.vmem [shape: bf16[32,64], index: 1, kind: input, shape index: {}]   ;;  %s803_s2 = inlined_call_operand.vmem [shape: f32[1,64], index: 2, kind: input, shape index: {}]   ;;  %s804_s3 = inlined_call_operand.vmem [shape: bf16[64,32], index: 3, kind: input, shape index: {}]   ;;  %s805_s4 = inlined_call_operand.vmem [shape: f32[1,32], index: 4, kind: input, shape index: {}]   ;;  %s806_s5 = inlined_call_operand.hbm [shape: bf16[32,32], index: 5, kind: output, shape index: {}]  }
   0x1   :  { %12 = vsyncpa [#allocation3 + $0x1], 0  ;;  %s675_s18 = smov 0   ;;  %s677_s19 = smov 0  }
   0x2   :  { %s679_s20 = smov 0   ;;  %s681_s21 = smov 0  }
   0x3 LB: > { %s696_s22 = sadd.s32 4294967295, %s638_s21   ;;  %s472_s23 = sadd.s32 4294967294, %s638_s21   ;;  %s638_s21 = sphi %s681_s21, %s812_s21   ;;  %s634_s20 = sphi %s679_s20, %s811_s20   ;;  %s630_s19 = sphi %s677_s19, %s810_s19   ;;  %s626_s18 = sphi %s675_s18, %s809_s18  }
   0x4   : > { %s700_s24 = sadd.s32 1, %s638_s21   ;;  %s135_s25 = sadd.s32 1, %s634_s20 }
   0x5   : > { %s132_s26 = ssub.s32 %s638_s21, %s700_s24  ;;  %p145_p0 = scmp.ne.s32.totalorder %s634_s20, %s630_s19 }
   0x6   : > { %p133_p1 = scmp.eq.s32.totalorder %s132_s26, 0  ;;  %p146_p2 = scmp.eq.s32.totalorder %s696_s22, 1 }
   0x7   : > { %p151_p3 = scmp.ne.s32.totalorder %s630_s19, %s626_s18  ;;  %p152_p4 = scmp.eq.s32.totalorder %s472_s23, 1 }
   0x8   : > { %s711_s27 = scalar_select %p133_p1, %s634_s20, %s135_s25  }
   0x9   : > { %p713_p5 = por %p146_p2, %p145_p0  ;;  %p717_p6 = por %p152_p4, %p151_p3 }
   0xa   : > { %p475_p7 = scmp.ge.s32.totalorder %s638_s21, 1  ;;  %p191_p8 = scmp.lt.s32.totalorder %s638_s21, 3 }
   0xc   : > { %p192_p9 = pnand %p475_p7, %p191_p8 }
   0xd   : > { %v570_v0 = vld [vmem:[%s802_s1] sm:$0xff] (!%p192_p9)   ;;  %v640_v1 = vmov (!%p192_p9), 0.0   ;;  %v571_v2 = vld [vmem:[%s802_s1 + $0x8] sm:$0xff] (!%p192_p9)   ;;  %vm641_vm0 = vmmov (!%p192_p9), 0   ;;  %s477_s9 = sshll.u32 (!%p192_p9), %s696_s22, 1  ;;  %vm253_vm1 = vcmask (!%p192_p9), 261120  }
   0xe   : > { %195 = sbr.rel (%p192_p9) target bundleno = 480 (0x1e0), region = 40  ;;  %507 = vmatprep.subr.bf16.mxu0 (!%p192_p9), %v640_v1  ;;  %515 = vmatprep.subr.bf16.mxu1 (!%p192_p9), %v640_v1  ;;  %p220_p10 = scmp.lt.s32.totalorder (!%p192_p9), %s477_s9, 3  ;;  %v572_v3 = vld [vmem:[%s804_s3] sm:$0xff] (!%p192_p9)   ;;  %v573_v4 = vld [vmem:[%s804_s3 + $0x8] sm:$0xff] (!%p192_p9)   ;;  %v574_v8 = vld [vmem:[%s804_s3 + $0x10] sm:$0xff] (!%p192_p9)   ;;  %vm340_vm2 = vcmask (!%p192_p9), 523264  }
   0xf   : > { %508 = vmatpush3.bf16.msra.mxu0 (!%p192_p9), %v570_v0  ;;  %511 = vmatprep.mubr.msk.bf16.mxu0 (!%p192_p9), %vm641_vm0, %v640_v1  ;;  %v575_v9 = vld [vmem:[%s804_s3 + $0x18] sm:$0xff] (!%p192_p9)   ;;  %v479_v10 = vld [vmem:[%s803_s2] ss:$0 sm:$0xff] (!%p192_p9)  ;;  %s216_s8 = sand.u32 (!%p192_p9), 1, %s630_s19   ;;  %vm393_vm3 = vcmask (!%p192_p9), 257024   ;;  %s642_s25 = smov (!%p192_p9), [#allocation2]  }
  0x10   : > { %509 = vmatprep.subr.bf16.mxu0 (!%p192_p9), %v640_v1  ;;  %523 = vmatprep.mubr.msk.bf16.mxu1 (!%p192_p9), %vm641_vm0, %v640_v1  ;;  %v483_v20 = vld [vmem:[%s805_s4] ss:$0 sm:$0xff] (!%p192_p9)  ;;  %s760_s23 = scalar_lea.sflag (!%p192_p9), [#allocation3], %s216_s8  ;;  %s580_s26 = sshll.u32 (!%p192_p9), %s642_s25, 4  ;;  %s581_s26 = int_to_ptr.vmem [resolvable:$false] %s580_s26 }
  0x11   : > { %516 = vmatpush3.bf16.msra.mxu1 (!%p192_p9), %v572_v3  ;;  %s582_s30 = scalar_lea.vmem (!%p192_p9), %s581_s26, 256 }
  0x12   : > { %517 = vmatprep.subr.bf16.mxu1 (!%p192_p9), %v640_v1 }
  0x13   : > { %510 = vmatpush3.bf16.msra.mxu0 (!%p192_p9), %v571_v2 }
  0x15   : > { %s814_s9 = smov (!%p220_p10, %s477_s9), 3  ;;  %518 = vmatpush3.bf16.msra.mxu1 %v573_v4 }
  0x16   : > { %s478_s14 = sshll.u32 %s814_s9, 3  ;;  %519 = vmatprep.subr.bf16.mxu1 %v640_v1  ;;  %s476_s9 = sshll.u32 %s216_s8, 3 }
  0x17   : > { %s223_s17 = scalar_lea.vmem %s801_s0, %s478_s14  ;;  %s218_s12 = scalar_lea.vmem [#allocation2], %s476_s9 }
  0x18   : > { %v227_v5 = vld [vmem:[%s223_s17] sm:$0xff]  ;;  %v228_v6 = vld [vmem:[%s223_s17 + $0x8] sm:$0xff]  ;;  %s410_s13 = sshll.u32 %s218_s12, 4  ;;  %s498_s14 = sshll.u32 %s696_s22, 7  ;;  %s753_s13 = int_to_ptr.vmem [resolvable:$true] %s410_s13 }
  0x19   : > { %v229_v7 = vpack.c.bf16 %v228_v6, %v227_v5  ;;  %520 = vmatpush3.bf16.msra.mxu1 %v574_v8  ;;  %s758_s17 = scalar_lea.hbm %s806_s5, %s498_s14  ;;  %s576_s22 = scalar_lea.vmem %s753_s13, 128 }
  0x1a   : > { %521 = vmatprep.subr.bf16.mxu1 %v640_v1  ;;  %p577_p11 = scmp.ne.s32.totalorder %s753_s13, %s576_s22  ;;  %p583_p0 = scmp.lt.s32.totalorder %s753_s13, %s581_s26 }
  0x1b   : > { %512 = vmatmul.mubr.msk.bf16.vlgmr.msra.gmra.mrb[0].mxu0 %vm253_vm1, %v229_v7  ;;  %p584_p1 = scmp.lt.s32.totalorder %s582_s30, %s576_s22 }
  0x1c   : > { %p578_p12 = pnand %p577_p11, %p713_p5 }
  0x1d   : > { %522 = vmatpush3.bf16.msra.mxu1 %v575_v9  ;;  %p585_p2 = por %p584_p1, %p583_p0 }
  0x1e   : > { %p579_p13 = pneg %p578_p12 }
  0x20   : > { %p586_p3 = pnand %p585_p2, %p579_p13 }
  0xee   : > { %v291_v11 = vpop.f32.mrb[0].mxu0 }
  0xef   : > { %v292_v12 = vadd.f32 %v479_v10, %v291_v11  ;;  %v513_v13 = vpop.f32.mrb[1].mxu0 }
  0xf0   : > { %v294_v14 = vpop.f32.mrb[2].mxu0 }
  0xf1   : > { %v295_v15 = vadd.f32 %v479_v10, %v294_v14  ;;  %v514_v16 = vpop.f32.mrb[3].mxu0  ;;  %v298_v17 = vmax.f32 %v292_v12, 0.0 }
  0xf3   : > { %v299_v18 = vmax.f32 %v295_v15, 0.0 }
  0xf5   : > { %v300_v19 = vpack.c.bf16 %v299_v18, %v298_v17 }
  0xf7   : > { %524 = vmatmul.mubr.msk.bf16.vlgmr.msra.gmra.mrb[0].mxu1 %vm340_vm2, %v300_v19 }
 0x1ca   : > { %v378_v21 = vpop.f32.mrb[0].mxu1 }
 0x1cb   : > { %v379_v22 = vadd.f32 %v483_v20, %v378_v21  ;;  %v525_v23 = vpop.f32.mrb[1].mxu1 }
 0x1cc   : > { %v381_v24 = vpop.f32.mrb[2].mxu1 }
 0x1cd   : > { %v496_v25 = vpack.c.bf16 %v379_v22, %v379_v22  ;;  %v382_v26 = vadd.f32 %v483_v20, %v381_v24  ;;  %v526_v27 = vpop.f32.mrb[3].mxu1 }
 0x1cf   : > { %394 = vst.msk [vmem:[%s218_s12] sm:$0xf] %vm393_vm3, %v496_v25  ;;  %v497_v28 = vpack.c.bf16 %v382_v26, %v382_v26 }
 0x1d1   : > { %395 = vst.msk [vmem:[%s218_s12 + $0x4] sm:$0xf] %vm393_vm3, %v497_v28 }
 0x1d2   : > { %589 = shalt.err (!%p586_p3)
}
 0x1d3   : > { %s590_s6 = scalar_lea.hbm %s758_s17, 128  ;;  %s594_s9 = scalar_lea.hbm %s806_s5, 256 }
 0x1d4   : > { %p591_p4 = scmp.ne.s32.totalorder %s758_s17, %s590_s6  ;;  %p595_p9 = scmp.lt.u32.totalorder %s758_s17, %s806_s5 }
 0x1d5   : > { %p596_p10 = scmp.lt.u32.totalorder %s594_s9, %s590_s6  ;;  %p598_p12 = scmp.lt.u32.totalorder %s590_s6, %s758_s17 }
 0x1d6   : > { %p592_p7 = pnand %p591_p4, %p713_p5 }
 0x1d7   : > { %p597_p11 = por %p596_p10, %p595_p9 }
 0x1d8   : > { %p593_p8 = pneg %p592_p7 }
 0x1d9   : > { %p599_p13 = por %p598_p12, %p597_p11 }
 0x1db   : > { %p600_p0 = pnand %p599_p13, %p593_p8 }
 0x1dd   : > { %603 = shalt.err (!%p600_p0)
}
 0x1de   : > { %s643_s12 = smov 64   ;;  %s644_s14 = smov 4  }
 0x1df   : > { %527 = dma.vmem_to_hbm [thread:$0]  (%p713_p5), %s753_s13, 128, %s758_s17, %s760_s23, %s643_s12, %s643_s12, %s644_s14  }
 0x1e0 PF: > { %p533_p1 = scmp.ge.s32.totalorder %s638_s21, 2  ;;  %s425_s15 = sand.u32 1, %s626_s18  }
 0x1e1   : > { %s426_s16 = scalar_lea.sflag [#allocation3], %s425_s15 }
 0x1e2   : > { %p530_p2 = pnand %p533_p1, %p717_p6 }
 0x1e4   : > { %621 = dma.done.wait (!%p530_p2), %s426_s16, 128  }
 0x1e5   : > { %623 = vsyncadd (!%p530_p2), %s426_s16, 4294967168  ;;  %p15_p3 = scmp.ge.s32.totalorder %s700_s24, 4   ;;  %s809_s18 = smov %s630_s19 }
 0x1e6   : > { %s810_s19 = smov %s634_s20  ;;  %s811_s20 = smov %s711_s27 }
 0x1e7   : > { %s812_s21 = smov %s700_s24  ;;  %17 = sbr.rel (!%p15_p3) target bundleno = 3 (0x3), region = 75 }
 0x1ee   :  { %431 = vsyncpa [#allocation3], 1 }
 0x1ef   :  { %433 = vsyncpa [#allocation3 + $0x1], 1 }

</bundles_post_ra>
